<compile_context>
chip_gen: v7x
topology: tpu7x:2x2x1
jax: 0.10.0
libtpu: 0.0.40
codegen_flags: <defaults>
</compile_context>

<pallas_src>
import functools

import jax
import jax.numpy as jnp
from jax.experimental import pallas as pl
from jax.experimental.pallas import tpu as pltpu


def _gru_kernel(x_ref, wi_ref, wh_ref, bi_ref, bhn_ref, out_ref, *, B, S, H):
    """Single-invocation GRU forward; everything resident in VMEM.

    x_ref   : (B*S, E)  flattened batch-first inputs (row b*S + t == x[b, t])
    wi_ref  : (E, 3H)   fused input-side weights  [W_ir^T | W_iz^T | W_in^T]
    wh_ref  : (H, 3H)   fused hidden-side weights [W_hr^T | W_hz^T | W_hn^T]
    bi_ref  : (1, 3H)   [b_ir + b_hr, b_iz + b_hz, b_in]  (r/z biases pre-added)
    bhn_ref : (1, 3H)   [0, 0, b_hn]                       (stays inside r*(...))
    out_ref : (B, S*H)  out[b, t*H:(t+1)*H] = h_t[b]
    """
    # Hoisted input-side projection: one large MXU matmul for all timesteps.
    gi = jnp.dot(x_ref[...], wi_ref[...], preferred_element_type=jnp.float32)
    gi = (gi + bi_ref[...]).reshape(B, S, 3 * H)          # (B, S, 3H)

    wh = wh_ref[...]                                      # (H, 3H), resident
    bhn = bhn_ref[...]                                    # (1, 3H)

    # Sequential recurrence: only the fused hidden-side matmul per step.
    # S is small & static -> trace-time unroll with static slice indices.
    h = jnp.zeros((B, H), jnp.float32)
    outs = []
    for t in range(S):
        gi_t = gi[:, t, :]                                # (B, 3H) static slice
        gh = jnp.dot(h, wh, preferred_element_type=jnp.float32) + bhn   # (B, 3H)
        rz = jax.nn.sigmoid(gi_t[:, : 2 * H] + gh[:, : 2 * H])
        r = rz[:, :H]
        z = rz[:, H:]
        n = jnp.tanh(gi_t[:, 2 * H:] + r * gh[:, 2 * H:])
        h = (1.0 - z) * n + z * h
        outs.append(h)

    # Single lane-dense store of all timestep outputs.
    out_ref[...] = jnp.concatenate(outs, axis=1).astype(out_ref.dtype)


@jax.jit
def rdm_model_forward(input_x, w_ih, w_hh, b_ih, b_hh):
    """Pallas implementation of RDM_Model.forward.

    input_x: [batch, seq, word_embedding_dim]  float32
    w_ih:    [3*hidden, word_embedding_dim]    (PyTorch gru.weight_ih_l0, gate order r,z,n)
    w_hh:    [3*hidden, hidden]
    b_ih:    [3*hidden]
    b_hh:    [3*hidden]
    returns: df_outputs [batch, seq, hidden]
    """
    B, S, E = input_x.shape
    H = w_hh.shape[1]
    f32 = jnp.float32

    # Fused gate weights, transposed once for right-multiplication (gate order r,z,n).
    wi_cat = jnp.transpose(w_ih).astype(f32)              # (E, 3H)
    wh_cat = jnp.transpose(w_hh).astype(f32)              # (H, 3H)

    # Pre-add the r/z biases; keep only b_hn separate (inside r * (...)).
    zeros_h = jnp.zeros((H,), f32)
    bi_cat = (b_ih.astype(f32)
              + jnp.concatenate([b_hh[: 2 * H].astype(f32), zeros_h])).reshape(1, 3 * H)
    bhn_pad = jnp.concatenate([zeros_h, zeros_h, b_hh[2 * H:].astype(f32)]).reshape(1, 3 * H)

    # Batch-first layout kept; this reshape is a free row-major view.
    x2d = input_x.astype(f32).reshape(B * S, E)

    kernel = functools.partial(_gru_kernel, B=B, S=S, H=H)
    vmem = pl.BlockSpec(memory_space=pltpu.MemorySpace.VMEM)

    out2d = pl.pallas_call(
        kernel,
        out_shape=jax.ShapeDtypeStruct((B, S * H), f32),
        in_specs=[vmem, vmem, vmem, vmem, vmem],
        out_specs=vmem,
    )(x2d, wi_cat, wh_cat, bi_cat, bhn_pad)

    # (B, S*H) -> (B, S, H): free row-major reshape, no transpose.
    return out2d.reshape(B, S, H)


def _gru_reference(input_x, w_ih, w_hh, b_ih, b_hh):
    """Pure-JAX reference (lax.scan) for correctness checking."""
    B, S, E = input_x.shape
    H = w_hh.shape[1]
    wi = jnp.transpose(w_ih.reshape(3, H, E), (0, 2, 1))
    wh = jnp.transpose(w_hh.reshape(3, H, H), (0, 2, 1))
    bi = b_ih.reshape(3, H)
    bh = b_hh.reshape(3, H)

    def step(h, x_t):
        gi = [x_t @ wi[k] + bi[k] for k in range(3)]
        gh = [h @ wh[k] + bh[k] for k in range(3)]
        r = jax.nn.sigmoid(gi[0] + gh[0])
        z = jax.nn.sigmoid(gi[1] + gh[1])
        n = jnp.tanh(gi[2] + r * gh[2])
        h_new = (1.0 - z) * n + z * h
        return h_new, h_new

    h0 = jnp.zeros((B, H), jnp.float32)
    _, ys = jax.lax.scan(step, h0, jnp.transpose(input_x, (1, 0, 2)))
    return jnp.transpose(ys, (1, 0, 2))


if __name__ == "__main__":
    # Model hyper-params (small, consistent with the module's __init__):
    word_embedding_dim = 48
    sent_embedding_dim = 48   # unused in forward, kept for fidelity
    hidden_dim = 32
    dropout_prob = 0.2        # no-op in this forward pass

    batch = 2
    seq = 8

    key = jax.random.PRNGKey(0)
    k_x, k_wih, k_whh, k_bih, k_bhh = jax.random.split(key, 5)

    # Deterministic parameter init, PyTorch-style uniform(-1/sqrt(H), 1/sqrt(H)).
    bound = 1.0 / jnp.sqrt(jnp.float32(hidden_dim))
    w_ih = jax.random.uniform(k_wih, (3 * hidden_dim, word_embedding_dim),
                              jnp.float32, -bound, bound)
    w_hh = jax.random.uniform(k_whh, (3 * hidden_dim, hidden_dim),
                              jnp.float32, -bound, bound)
    b_ih = jax.random.uniform(k_bih, (3 * hidden_dim,), jnp.float32, -bound, bound)
    b_hh = jax.random.uniform(k_bhh, (3 * hidden_dim,), jnp.float32, -bound, bound)

    input_x = jax.random.normal(k_x, (batch, seq, word_embedding_dim), jnp.float32)

    df_outputs = rdm_model_forward(input_x, w_ih, w_hh, b_ih, b_hh)
    df_outputs = jax.block_until_ready(df_outputs)

    assert df_outputs.shape == (batch, seq, hidden_dim)

    ref = _gru_reference(input_x, w_ih, w_hh, b_ih, b_hh)
    assert jnp.allclose(df_outputs, ref, atol=1e-5, rtol=1e-5), "mismatch vs reference"

    print("KERNEL_OK")
</pallas_src>

<mosaic_0001>
module attributes {stable_mosaic.version = 11 : i64} {
  func.func @_gru_kernel(%arg0: memref<16x48xf32, #tpu.memory_space<vmem>>, %arg1: memref<48x96xf32, #tpu.memory_space<vmem>>, %arg2: memref<32x96xf32, #tpu.memory_space<vmem>>, %arg3: memref<1x96xf32, #tpu.memory_space<vmem>>, %arg4: memref<1x96xf32, #tpu.memory_space<vmem>>, %arg5: memref<2x256xf32, #tpu.memory_space<vmem>>) attributes {dimension_semantics = [], scalar_prefetch = 0 : i64, scratch_operands = 0 : i64, tpu.core_type = #tpu.core_type<tc>} {
    %c0 = arith.constant 0 : index
    %c0_0 = arith.constant 0 : index
    %0 = vector.load %arg0[%c0, %c0_0] : memref<16x48xf32, #tpu.memory_space<vmem>>, vector<16x48xf32>
    %c0_1 = arith.constant 0 : index
    %c0_2 = arith.constant 0 : index
    %1 = vector.load %arg1[%c0_1, %c0_2] : memref<48x96xf32, #tpu.memory_space<vmem>>, vector<48x96xf32>
    %cst = arith.constant dense<0.000000e+00> : vector<16x96xf32>
    %2 = tpu.matmul %0, %1, %cst {dimension_numbers = #tpu.dot_dimension_numbers<[1], [0], [0], [1], [0, 0, 1, 1], [], []>} : vector<16x48xf32>, vector<48x96xf32>, vector<16x96xf32> -> vector<16x96xf32>
    %c0_3 = arith.constant 0 : index
    %c0_4 = arith.constant 0 : index
    %3 = vector.load %arg3[%c0_3, %c0_4] : memref<1x96xf32, #tpu.memory_space<vmem>>, vector<1x96xf32>
    %4 = vector.broadcast %3 : vector<1x96xf32> to vector<16x96xf32>
    %5 = arith.addf %2, %4 : vector<16x96xf32>
    %6 = vector.shape_cast %5 : vector<16x96xf32> to vector<2x8x96xf32>
    %c0_5 = arith.constant 0 : index
    %c0_6 = arith.constant 0 : index
    %7 = vector.load %arg2[%c0_5, %c0_6] : memref<32x96xf32, #tpu.memory_space<vmem>>, vector<32x96xf32>
    %c0_7 = arith.constant 0 : index
    %c0_8 = arith.constant 0 : index
    %8 = vector.load %arg4[%c0_7, %c0_8] : memref<1x96xf32, #tpu.memory_space<vmem>>, vector<1x96xf32>
    %cst_9 = arith.constant 0.000000e+00 : f32
    %9 = vector.broadcast %cst_9 : f32 to vector<2x32xf32>
    %10 = vector.extract_strided_slice %6 {offsets = [0, 0, 0], sizes = [2, 1, 96], strides = [1, 1, 1]} : vector<2x8x96xf32> to vector<2x1x96xf32>
    %11 = vector.shape_cast %10 : vector<2x1x96xf32> to vector<2x96xf32>
    %cst_10 = arith.constant dense<0.000000e+00> : vector<2x96xf32>
    %12 = tpu.matmul %9, %7, %cst_10 {dimension_numbers = #tpu.dot_dimension_numbers<[1], [0], [0], [1], [0, 0, 1, 1], [], []>} : vector<2x32xf32>, vector<32x96xf32>, vector<2x96xf32> -> vector<2x96xf32>
    %13 = vector.broadcast %8 : vector<1x96xf32> to vector<2x96xf32>
    %14 = arith.addf %12, %13 : vector<2x96xf32>
    %15 = vector.extract_strided_slice %11 {offsets = [0, 0], sizes = [2, 64], strides = [1, 1]} : vector<2x96xf32> to vector<2x64xf32>
    %16 = vector.extract_strided_slice %14 {offsets = [0, 0], sizes = [2, 64], strides = [1, 1]} : vector<2x96xf32> to vector<2x64xf32>
    %17 = arith.addf %15, %16 : vector<2x64xf32>
    %18 = arith.negf %17 : vector<2x64xf32>
    %19 = math.exp %18 : vector<2x64xf32>
    %cst_11 = arith.constant 1.000000e+00 : f32
    %20 = vector.broadcast %cst_11 : f32 to vector<2x64xf32>
    %21 = arith.addf %20, %19 : vector<2x64xf32>
    %22 = arith.divf %20, %21 : vector<2x64xf32>
    %23 = vector.extract_strided_slice %22 {offsets = [0, 0], sizes = [2, 32], strides = [1, 1]} : vector<2x64xf32> to vector<2x32xf32>
    %24 = vector.extract_strided_slice %22 {offsets = [0, 32], sizes = [2, 32], strides = [1, 1]} : vector<2x64xf32> to vector<2x32xf32>
    %25 = vector.extract_strided_slice %11 {offsets = [0, 64], sizes = [2, 32], strides = [1, 1]} : vector<2x96xf32> to vector<2x32xf32>
    %26 = vector.extract_strided_slice %14 {offsets = [0, 64], sizes = [2, 32], strides = [1, 1]} : vector<2x96xf32> to vector<2x32xf32>
    %27 = arith.mulf %23, %26 : vector<2x32xf32>
    %28 = arith.addf %25, %27 : vector<2x32xf32>
    %29 = math.tanh %28 : vector<2x32xf32>
    %cst_12 = arith.constant 1.000000e+00 : f32
    %30 = vector.broadcast %cst_12 : f32 to vector<2x32xf32>
    %31 = arith.subf %30, %24 : vector<2x32xf32>
    %32 = arith.mulf %31, %29 : vector<2x32xf32>
    %33 = arith.mulf %24, %9 : vector<2x32xf32>
    %34 = arith.addf %32, %33 : vector<2x32xf32>
    %35 = vector.extract_strided_slice %6 {offsets = [0, 1, 0], sizes = [2, 1, 96], strides = [1, 1, 1]} : vector<2x8x96xf32> to vector<2x1x96xf32>
    %36 = vector.shape_cast %35 : vector<2x1x96xf32> to vector<2x96xf32>
    %cst_13 = arith.constant dense<0.000000e+00> : vector<2x96xf32>
    %37 = tpu.matmul %34, %7, %cst_13 {dimension_numbers = #tpu.dot_dimension_numbers<[1], [0], [0], [1], [0, 0, 1, 1], [], []>} : vector<2x32xf32>, vector<32x96xf32>, vector<2x96xf32> -> vector<2x96xf32>
    %38 = vector.broadcast %8 : vector<1x96xf32> to vector<2x96xf32>
    %39 = arith.addf %37, %38 : vector<2x96xf32>
    %40 = vector.extract_strided_slice %36 {offsets = [0, 0], sizes = [2, 64], strides = [1, 1]} : vector<2x96xf32> to vector<2x64xf32>
    %41 = vector.extract_strided_slice %39 {offsets = [0, 0], sizes = [2, 64], strides = [1, 1]} : vector<2x96xf32> to vector<2x64xf32>
    %42 = arith.addf %40, %41 : vector<2x64xf32>
    %43 = arith.negf %42 : vector<2x64xf32>
    %44 = math.exp %43 : vector<2x64xf32>
    %cst_14 = arith.constant 1.000000e+00 : f32
    %45 = vector.broadcast %cst_14 : f32 to vector<2x64xf32>
    %46 = arith.addf %45, %44 : vector<2x64xf32>
    %47 = arith.divf %45, %46 : vector<2x64xf32>
    %48 = vector.extract_strided_slice %47 {offsets = [0, 0], sizes = [2, 32], strides = [1, 1]} : vector<2x64xf32> to vector<2x32xf32>
    %49 = vector.extract_strided_slice %47 {offsets = [0, 32], sizes = [2, 32], strides = [1, 1]} : vector<2x64xf32> to vector<2x32xf32>
    %50 = vector.extract_strided_slice %36 {offsets = [0, 64], sizes = [2, 32], strides = [1, 1]} : vector<2x96xf32> to vector<2x32xf32>
    %51 = vector.extract_strided_slice %39 {offsets = [0, 64], sizes = [2, 32], strides = [1, 1]} : vector<2x96xf32> to vector<2x32xf32>
    %52 = arith.mulf %48, %51 : vector<2x32xf32>
    %53 = arith.addf %50, %52 : vector<2x32xf32>
    %54 = math.tanh %53 : vector<2x32xf32>
    %cst_15 = arith.constant 1.000000e+00 : f32
    %55 = vector.broadcast %cst_15 : f32 to vector<2x32xf32>
    %56 = arith.subf %55, %49 : vector<2x32xf32>
    %57 = arith.mulf %56, %54 : vector<2x32xf32>
    %58 = arith.mulf %49, %34 : vector<2x32xf32>
    %59 = arith.addf %57, %58 : vector<2x32xf32>
    %60 = vector.extract_strided_slice %6 {offsets = [0, 2, 0], sizes = [2, 1, 96], strides = [1, 1, 1]} : vector<2x8x96xf32> to vector<2x1x96xf32>
    %61 = vector.shape_cast %60 : vector<2x1x96xf32> to vector<2x96xf32>
    %cst_16 = arith.constant dense<0.000000e+00> : vector<2x96xf32>
    %62 = tpu.matmul %59, %7, %cst_16 {dimension_numbers = #tpu.dot_dimension_numbers<[1], [0], [0], [1], [0, 0, 1, 1], [], []>} : vector<2x32xf32>, vector<32x96xf32>, vector<2x96xf32> -> vector<2x96xf32>
    %63 = vector.broadcast %8 : vector<1x96xf32> to vector<2x96xf32>
    %64 = arith.addf %62, %63 : vector<2x96xf32>
    %65 = vector.extract_strided_slice %61 {offsets = [0, 0], sizes = [2, 64], strides = [1, 1]} : vector<2x96xf32> to vector<2x64xf32>
    %66 = vector.extract_strided_slice %64 {offsets = [0, 0], sizes = [2, 64], strides = [1, 1]} : vector<2x96xf32> to vector<2x64xf32>
    %67 = arith.addf %65, %66 : vector<2x64xf32>
    %68 = arith.negf %67 : vector<2x64xf32>
    %69 = math.exp %68 : vector<2x64xf32>
    %cst_17 = arith.constant 1.000000e+00 : f32
    %70 = vector.broadcast %cst_17 : f32 to vector<2x64xf32>
    %71 = arith.addf %70, %69 : vector<2x64xf32>
    %72 = arith.divf %70, %71 : vector<2x64xf32>
    %73 = vector.extract_strided_slice %72 {offsets = [0, 0], sizes = [2, 32], strides = [1, 1]} : vector<2x64xf32> to vector<2x32xf32>
    %74 = vector.extract_strided_slice %72 {offsets = [0, 32], sizes = [2, 32], strides = [1, 1]} : vector<2x64xf32> to vector<2x32xf32>
    %75 = vector.extract_strided_slice %61 {offsets = [0, 64], sizes = [2, 32], strides = [1, 1]} : vector<2x96xf32> to vector<2x32xf32>
    %76 = vector.extract_strided_slice %64 {offsets = [0, 64], sizes = [2, 32], strides = [1, 1]} : vector<2x96xf32> to vector<2x32xf32>
    %77 = arith.mulf %73, %76 : vector<2x32xf32>
    %78 = arith.addf %75, %77 : vector<2x32xf32>
    %79 = math.tanh %78 : vector<2x32xf32>
    %cst_18 = arith.constant 1.000000e+00 : f32
    %80 = vector.broadcast %cst_18 : f32 to vector<2x32xf32>
    %81 = arith.subf %80, %74 : vector<2x32xf32>
    %82 = arith.mulf %81, %79 : vector<2x32xf32>
    %83 = arith.mulf %74, %59 : vector<2x32xf32>
    %84 = arith.addf %82, %83 : vector<2x32xf32>
    %85 = vector.extract_strided_slice %6 {offsets = [0, 3, 0], sizes = [2, 1, 96], strides = [1, 1, 1]} : vector<2x8x96xf32> to vector<2x1x96xf32>
    %86 = vector.shape_cast %85 : vector<2x1x96xf32> to vector<2x96xf32>
    %cst_19 = arith.constant dense<0.000000e+00> : vector<2x96xf32>
    %87 = tpu.matmul %84, %7, %cst_19 {dimension_numbers = #tpu.dot_dimension_numbers<[1], [0], [0], [1], [0, 0, 1, 1], [], []>} : vector<2x32xf32>, vector<32x96xf32>, vector<2x96xf32> -> vector<2x96xf32>
    %88 = vector.broadcast %8 : vector<1x96xf32> to vector<2x96xf32>
    %89 = arith.addf %87, %88 : vector<2x96xf32>
    %90 = vector.extract_strided_slice %86 {offsets = [0, 0], sizes = [2, 64], strides = [1, 1]} : vector<2x96xf32> to vector<2x64xf32>
    %91 = vector.extract_strided_slice %89 {offsets = [0, 0], sizes = [2, 64], strides = [1, 1]} : vector<2x96xf32> to vector<2x64xf32>
    %92 = arith.addf %90, %91 : vector<2x64xf32>
    %93 = arith.negf %92 : vector<2x64xf32>
    %94 = math.exp %93 : vector<2x64xf32>
    %cst_20 = arith.constant 1.000000e+00 : f32
    %95 = vector.broadcast %cst_20 : f32 to vector<2x64xf32>
    %96 = arith.addf %95, %94 : vector<2x64xf32>
    %97 = arith.divf %95, %96 : vector<2x64xf32>
    %98 = vector.extract_strided_slice %97 {offsets = [0, 0], sizes = [2, 32], strides = [1, 1]} : vector<2x64xf32> to vector<2x32xf32>
    %99 = vector.extract_strided_slice %97 {offsets = [0, 32], sizes = [2, 32], strides = [1, 1]} : vector<2x64xf32> to vector<2x32xf32>
    %100 = vector.extract_strided_slice %86 {offsets = [0, 64], sizes = [2, 32], strides = [1, 1]} : vector<2x96xf32> to vector<2x32xf32>
    %101 = vector.extract_strided_slice %89 {offsets = [0, 64], sizes = [2, 32], strides = [1, 1]} : vector<2x96xf32> to vector<2x32xf32>
    %102 = arith.mulf %98, %101 : vector<2x32xf32>
    %103 = arith.addf %100, %102 : vector<2x32xf32>
    %104 = math.tanh %103 : vector<2x32xf32>
    %cst_21 = arith.constant 1.000000e+00 : f32
    %105 = vector.broadcast %cst_21 : f32 to vector<2x32xf32>
    %106 = arith.subf %105, %99 : vector<2x32xf32>
    %107 = arith.mulf %106, %104 : vector<2x32xf32>
    %108 = arith.mulf %99, %84 : vector<2x32xf32>
    %109 = arith.addf %107, %108 : vector<2x32xf32>
    %110 = vector.extract_strided_slice %6 {offsets = [0, 4, 0], sizes = [2, 1, 96], strides = [1, 1, 1]} : vector<2x8x96xf32> to vector<2x1x96xf32>
    %111 = vector.shape_cast %110 : vector<2x1x96xf32> to vector<2x96xf32>
    %cst_22 = arith.constant dense<0.000000e+00> : vector<2x96xf32>
    %112 = tpu.matmul %109, %7, %cst_22 {dimension_numbers = #tpu.dot_dimension_numbers<[1], [0], [0], [1], [0, 0, 1, 1], [], []>} : vector<2x32xf32>, vector<32x96xf32>, vector<2x96xf32> -> vector<2x96xf32>
    %113 = vector.broadcast %8 : vector<1x96xf32> to vector<2x96xf32>
    %114 = arith.addf %112, %113 : vector<2x96xf32>
    %115 = vector.extract_strided_slice %111 {offsets = [0, 0], sizes = [2, 64], strides = [1, 1]} : vector<2x96xf32> to vector<2x64xf32>
    %116 = vector.extract_strided_slice %114 {offsets = [0, 0], sizes = [2, 64], strides = [1, 1]} : vector<2x96xf32> to vector<2x64xf32>
    %117 = arith.addf %115, %116 : vector<2x64xf32>
    %118 = arith.negf %117 : vector<2x64xf32>
    %119 = math.exp %118 : vector<2x64xf32>
    %cst_23 = arith.constant 1.000000e+00 : f32
    %120 = vector.broadcast %cst_23 : f32 to vector<2x64xf32>
    %121 = arith.addf %120, %119 : vector<2x64xf32>
    %122 = arith.divf %120, %121 : vector<2x64xf32>
    %123 = vector.extract_strided_slice %122 {offsets = [0, 0], sizes = [2, 32], strides = [1, 1]} : vector<2x64xf32> to vector<2x32xf32>
    %124 = vector.extract_strided_slice %122 {offsets = [0, 32], sizes = [2, 32], strides = [1, 1]} : vector<2x64xf32> to vector<2x32xf32>
    %125 = vector.extract_strided_slice %111 {offsets = [0, 64], sizes = [2, 32], strides = [1, 1]} : vector<2x96xf32> to vector<2x32xf32>
    %126 = vector.extract_strided_slice %114 {offsets = [0, 64], sizes = [2, 32], strides = [1, 1]} : vector<2x96xf32> to vector<2x32xf32>
    %127 = arith.mulf %123, %126 : vector<2x32xf32>
    %128 = arith.addf %125, %127 : vector<2x32xf32>
    %129 = math.tanh %128 : vector<2x32xf32>
    %cst_24 = arith.constant 1.000000e+00 : f32
    %130 = vector.broadcast %cst_24 : f32 to vector<2x32xf32>
    %131 = arith.subf %130, %124 : vector<2x32xf32>
    %132 = arith.mulf %131, %129 : vector<2x32xf32>
    %133 = arith.mulf %124, %109 : vector<2x32xf32>
    %134 = arith.addf %132, %133 : vector<2x32xf32>
    %135 = vector.extract_strided_slice %6 {offsets = [0, 5, 0], sizes = [2, 1, 96], strides = [1, 1, 1]} : vector<2x8x96xf32> to vector<2x1x96xf32>
    %136 = vector.shape_cast %135 : vector<2x1x96xf32> to vector<2x96xf32>
    %cst_25 = arith.constant dense<0.000000e+00> : vector<2x96xf32>
    %137 = tpu.matmul %134, %7, %cst_25 {dimension_numbers = #tpu.dot_dimension_numbers<[1], [0], [0], [1], [0, 0, 1, 1], [], []>} : vector<2x32xf32>, vector<32x96xf32>, vector<2x96xf32> -> vector<2x96xf32>
    %138 = vector.broadcast %8 : vector<1x96xf32> to vector<2x96xf32>
    %139 = arith.addf %137, %138 : vector<2x96xf32>
    %140 = vector.extract_strided_slice %136 {offsets = [0, 0], sizes = [2, 64], strides = [1, 1]} : vector<2x96xf32> to vector<2x64xf32>
    %141 = vector.extract_strided_slice %139 {offsets = [0, 0], sizes = [2, 64], strides = [1, 1]} : vector<2x96xf32> to vector<2x64xf32>
    %142 = arith.addf %140, %141 : vector<2x64xf32>
    %143 = arith.negf %142 : vector<2x64xf32>
    %144 = math.exp %143 : vector<2x64xf32>
    %cst_26 = arith.constant 1.000000e+00 : f32
    %145 = vector.broadcast %cst_26 : f32 to vector<2x64xf32>
    %146 = arith.addf %145, %144 : vector<2x64xf32>
    %147 = arith.divf %145, %146 : vector<2x64xf32>
    %148 = vector.extract_strided_slice %147 {offsets = [0, 0], sizes = [2, 32], strides = [1, 1]} : vector<2x64xf32> to vector<2x32xf32>
    %149 = vector.extract_strided_slice %147 {offsets = [0, 32], sizes = [2, 32], strides = [1, 1]} : vector<2x64xf32> to vector<2x32xf32>
    %150 = vector.extract_strided_slice %136 {offsets = [0, 64], sizes = [2, 32], strides = [1, 1]} : vector<2x96xf32> to vector<2x32xf32>
    %151 = vector.extract_strided_slice %139 {offsets = [0, 64], sizes = [2, 32], strides = [1, 1]} : vector<2x96xf32> to vector<2x32xf32>
    %152 = arith.mulf %148, %151 : vector<2x32xf32>
    %153 = arith.addf %150, %152 : vector<2x32xf32>
    %154 = math.tanh %153 : vector<2x32xf32>
    %cst_27 = arith.constant 1.000000e+00 : f32
    %155 = vector.broadcast %cst_27 : f32 to vector<2x32xf32>
    %156 = arith.subf %155, %149 : vector<2x32xf32>
    %157 = arith.mulf %156, %154 : vector<2x32xf32>
    %158 = arith.mulf %149, %134 : vector<2x32xf32>
    %159 = arith.addf %157, %158 : vector<2x32xf32>
    %160 = vector.extract_strided_slice %6 {offsets = [0, 6, 0], sizes = [2, 1, 96], strides = [1, 1, 1]} : vector<2x8x96xf32> to vector<2x1x96xf32>
    %161 = vector.shape_cast %160 : vector<2x1x96xf32> to vector<2x96xf32>
    %cst_28 = arith.constant dense<0.000000e+00> : vector<2x96xf32>
    %162 = tpu.matmul %159, %7, %cst_28 {dimension_numbers = #tpu.dot_dimension_numbers<[1], [0], [0], [1], [0, 0, 1, 1], [], []>} : vector<2x32xf32>, vector<32x96xf32>, vector<2x96xf32> -> vector<2x96xf32>
    %163 = vector.broadcast %8 : vector<1x96xf32> to vector<2x96xf32>
    %164 = arith.addf %162, %163 : vector<2x96xf32>
    %165 = vector.extract_strided_slice %161 {offsets = [0, 0], sizes = [2, 64], strides = [1, 1]} : vector<2x96xf32> to vector<2x64xf32>
    %166 = vector.extract_strided_slice %164 {offsets = [0, 0], sizes = [2, 64], strides = [1, 1]} : vector<2x96xf32> to vector<2x64xf32>
    %167 = arith.addf %165, %166 : vector<2x64xf32>
    %168 = arith.negf %167 : vector<2x64xf32>
    %169 = math.exp %168 : vector<2x64xf32>
    %cst_29 = arith.constant 1.000000e+00 : f32
    %170 = vector.broadcast %cst_29 : f32 to vector<2x64xf32>
    %171 = arith.addf %170, %169 : vector<2x64xf32>
    %172 = arith.divf %170, %171 : vector<2x64xf32>
    %173 = vector.extract_strided_slice %172 {offsets = [0, 0], sizes = [2, 32], strides = [1, 1]} : vector<2x64xf32> to vector<2x32xf32>
    %174 = vector.extract_strided_slice %172 {offsets = [0, 32], sizes = [2, 32], strides = [1, 1]} : vector<2x64xf32> to vector<2x32xf32>
    %175 = vector.extract_strided_slice %161 {offsets = [0, 64], sizes = [2, 32], strides = [1, 1]} : vector<2x96xf32> to vector<2x32xf32>
    %176 = vector.extract_strided_slice %164 {offsets = [0, 64], sizes = [2, 32], strides = [1, 1]} : vector<2x96xf32> to vector<2x32xf32>
    %177 = arith.mulf %173, %176 : vector<2x32xf32>
    %178 = arith.addf %175, %177 : vector<2x32xf32>
    %179 = math.tanh %178 : vector<2x32xf32>
    %cst_30 = arith.constant 1.000000e+00 : f32
    %180 = vector.broadcast %cst_30 : f32 to vector<2x32xf32>
    %181 = arith.subf %180, %174 : vector<2x32xf32>
    %182 = arith.mulf %181, %179 : vector<2x32xf32>
    %183 = arith.mulf %174, %159 : vector<2x32xf32>
    %184 = arith.addf %182, %183 : vector<2x32xf32>
    %185 = vector.extract_strided_slice %6 {offsets = [0, 7, 0], sizes = [2, 1, 96], strides = [1, 1, 1]} : vector<2x8x96xf32> to vector<2x1x96xf32>
    %186 = vector.shape_cast %185 : vector<2x1x96xf32> to vector<2x96xf32>
    %cst_31 = arith.constant dense<0.000000e+00> : vector<2x96xf32>
    %187 = tpu.matmul %184, %7, %cst_31 {dimension_numbers = #tpu.dot_dimension_numbers<[1], [0], [0], [1], [0, 0, 1, 1], [], []>} : vector<2x32xf32>, vector<32x96xf32>, vector<2x96xf32> -> vector<2x96xf32>
    %188 = vector.broadcast %8 : vector<1x96xf32> to vector<2x96xf32>
    %189 = arith.addf %187, %188 : vector<2x96xf32>
    %190 = vector.extract_strided_slice %186 {offsets = [0, 0], sizes = [2, 64], strides = [1, 1]} : vector<2x96xf32> to vector<2x64xf32>
    %191 = vector.extract_strided_slice %189 {offsets = [0, 0], sizes = [2, 64], strides = [1, 1]} : vector<2x96xf32> to vector<2x64xf32>
    %192 = arith.addf %190, %191 : vector<2x64xf32>
    %193 = arith.negf %192 : vector<2x64xf32>
    %194 = math.exp %193 : vector<2x64xf32>
    %cst_32 = arith.constant 1.000000e+00 : f32
    %195 = vector.broadcast %cst_32 : f32 to vector<2x64xf32>
    %196 = arith.addf %195, %194 : vector<2x64xf32>
    %197 = arith.divf %195, %196 : vector<2x64xf32>
    %198 = vector.extract_strided_slice %197 {offsets = [0, 0], sizes = [2, 32], strides = [1, 1]} : vector<2x64xf32> to vector<2x32xf32>
    %199 = vector.extract_strided_slice %197 {offsets = [0, 32], sizes = [2, 32], strides = [1, 1]} : vector<2x64xf32> to vector<2x32xf32>
    %200 = vector.extract_strided_slice %186 {offsets = [0, 64], sizes = [2, 32], strides = [1, 1]} : vector<2x96xf32> to vector<2x32xf32>
    %201 = vector.extract_strided_slice %189 {offsets = [0, 64], sizes = [2, 32], strides = [1, 1]} : vector<2x96xf32> to vector<2x32xf32>
    %202 = arith.mulf %198, %201 : vector<2x32xf32>
    %203 = arith.addf %200, %202 : vector<2x32xf32>
    %204 = math.tanh %203 : vector<2x32xf32>
    %cst_33 = arith.constant 1.000000e+00 : f32
    %205 = vector.broadcast %cst_33 : f32 to vector<2x32xf32>
    %206 = arith.subf %205, %199 : vector<2x32xf32>
    %207 = arith.mulf %206, %204 : vector<2x32xf32>
    %208 = arith.mulf %199, %184 : vector<2x32xf32>
    %209 = arith.addf %207, %208 : vector<2x32xf32>
    %210 = tpu.concatenate %34, %59, %84, %109, %134, %159, %184, %209 in 1 : vector<2x32xf32>, vector<2x32xf32>, vector<2x32xf32>, vector<2x32xf32>, vector<2x32xf32>, vector<2x32xf32>, vector<2x32xf32>, vector<2x32xf32> -> vector<2x256xf32>
    %c0_34 = arith.constant 0 : index
    %c0_35 = arith.constant 0 : index
    %211 = vector.load %arg5[%c0_34, %c0_35] : memref<2x256xf32, #tpu.memory_space<vmem>>, vector<2x256xf32>
    tpu.vector_store %arg5[%c0_34, %c0_35], %210 {strides = array<i32>} : memref<2x256xf32, #tpu.memory_space<vmem>>, vector<2x256xf32>,
    return
  }
}

</mosaic_0001>

<bundles_post_ra>
// kernel: rdm_model_forward.1
= control target key start
LH: loop header
LB: loop body
LE: loop exit
PB: predicated region body
PF: predicated region fallthrough
CT: control target
= control target key end

     0   :  { %10 = vsyncpa [#allocation3], 0  ;;  %s1974_s0 = inlined_call_operand.hbm [shape: f32[16,48], index: 0, kind: input, shape index: {}]   ;;  %s1975_s1 = inlined_call_operand.hbm [shape: f32[48,96], index: 1, kind: input, shape index: {}]   ;;  %s1976_s2 = inlined_call_operand.vmem [shape: f32[32,96], index: 2, kind: input, shape index: {}]   ;;  %s1977_s3 = inlined_call_operand.vmem [shape: f32[1,96], index: 3, kind: input, shape index: {}]   ;;  %s1978_s4 = inlined_call_operand.vmem [shape: f32[1,96], index: 4, kind: input, shape index: {}]   ;;  %s1979_s5 = inlined_call_operand.vmem [shape: f32[2,256], index: 5, kind: output, shape index: {}]  }
   0x1   :  { %11 = vsyncpa [#allocation5], 0  ;;  %s1687_s18 = smov [#allocation2]   ;;  %s1639_s22 = scalar_lea.hbm %s1974_s0, 256 }
   0x2   :  { %s17_s19 = sshll.u32 %s1687_s18, 4  ;;  %p1640_p0 = scmp.ne.s32.totalorder %s1974_s0, %s1639_s22  ;;  %s18_s19 = int_to_ptr.vmem [resolvable:$true] %s17_s19 }
   0x3   :  { %p1643_p1 = scmp.lt.u32.totalorder %s1639_s22, %s1974_s0 }
   0x5   :  { %p1645_p2 = pnand %p1643_p1, %p1640_p0 }
   0x7   :  { %1648 = shalt.err (!%p1645_p2)
}
   0x8   :  { %s1649_s27 = scalar_lea.vmem %s18_s19, 256  ;;  %p1654_p4 = scmp.lt.s32.totalorder %s18_s19, %s18_s19 }
   0x9   :  { %p1650_p3 = scmp.ne.s32.totalorder %s18_s19, %s1649_s27  ;;  %p1655_p5 = scmp.lt.s32.totalorder %s1649_s27, %s1649_s27 }
   0xb   :  { %p1656_p6 = por %p1655_p5, %p1654_p4 }
   0xd   :  { %p1657_p7 = pnand %p1656_p6, %p1650_p3 }
   0xf   :  { %1660 = shalt.err (!%p1657_p7)
}
  0x10   :  { %s1688_s28 = smov 128   ;;  %s1689_s29 = smov 8  }
  0x11   :  { %23 = dma.hbm_to_vmem [thread:$0]  %s1974_s0, 256, %s18_s19, [#allocation3], %s1688_s28, %s1688_s28, %s1689_s29  }
  0x12   :  { %s1690_s7 = smov [#allocation4]   ;;  %s1661_s11 = scalar_lea.hbm %s1975_s1, 768 }
  0x13   :  { %s29_s8 = sshll.u32 %s1690_s7, 4  ;;  %p1662_p8 = scmp.ne.s32.totalorder %s1975_s1, %s1661_s11  ;;  %s30_s8 = int_to_ptr.vmem [resolvable:$true] %s29_s8 }
  0x14   :  { %p1665_p9 = scmp.lt.u32.totalorder %s1661_s11, %s1975_s1 }
  0x16   :  { %p1667_p10 = pnand %p1665_p9, %p1662_p8 }
  0x18   :  { %1670 = shalt.err (!%p1667_p10)
}
  0x19   :  { %s1671_s16 = scalar_lea.vmem %s30_s8, 768  ;;  %p1676_p12 = scmp.lt.s32.totalorder %s30_s8, %s30_s8 }
  0x1a   :  { %p1672_p11 = scmp.ne.s32.totalorder %s30_s8, %s1671_s16  ;;  %p1677_p13 = scmp.lt.s32.totalorder %s1671_s16, %s1671_s16 }
  0x1c   :  { %p1678_p0 = por %p1677_p13, %p1676_p12 }
  0x1e   :  { %p1679_p1 = pnand %p1678_p0, %p1672_p11 }
  0x20   :  { %1682 = shalt.err (!%p1679_p1)
}
  0x21   :  { %35 = dma.hbm_to_vmem [thread:$0]  %s1975_s1, 768, %s30_s8, [#allocation5], %s1688_s28, %s1688_s28, %s1689_s29  }
  0x22   :  { %1683 = dma.done.wait [#allocation3], 256  }
  0x23   :  { %1684 = vsyncadd [#allocation3], 4294967040 }
  0x24   :  { %1685 = dma.done.wait [#allocation5], 768  }
  0x25   :  { %1686 = vsyncadd [#allocation5], 4294966528  ;;  %v1691_v0 = vmov 0.0|0.0   ;;  %vm1692_vm0 = vmmov 0   ;;  %v1693_v1 = vmov 0.0   ;;  %v50_v2 = vld [vmem:[#allocation4] sm:$0xff] }
  0x26   :  { %1485 = vmatprep.subr.bf16.mxu1 %v1691_v0  ;;  %1393 = vmatprep.mubr.msk.f32.mxu1 %vm1692_vm0, %v1693_v1  ;;  %v51_v3 = vld [vmem:[#allocation4 + $0x8] sm:$0xff]  ;;  %v145_v4 = vld [vmem:[%s1976_s2] sm:$0xff]  ;;  %v146_v6 = vld [vmem:[%s1976_s2 + $0x8] sm:$0xff]  ;;  %vm63_vm1 = vcmask 392192   ;;  %s1694_s26 = smov 64   ;;  %vm287_vm2 = vcmask 1041409  }
  0x27   :  { %v1473_v5 = vpack.c.bf16 %v51_v3, %v50_v2  ;;  %v52_v7 = vld [vmem:[#allocation4 + $0x10] sm:$0xff]  ;;  %v53_v8 = vld [vmem:[#allocation4 + $0x18] sm:$0xff]  ;;  %v1760_v9 = vpack.c.bf16 %v146_v6, %v145_v4  ;;  %v147_v11 = vld [vmem:[%s1976_s2 + $0x10] sm:$0xff]  ;;  %vm156_vm3 = vcmask 261120   ;;  %vm1269_vm4 = vcmask 523264  }
  0x28   :  { %v1477_v10 = vpack.c.bf16 %v53_v8, %v52_v7  ;;  %v148_v12 = vld [vmem:[%s1976_s2 + $0x18] sm:$0xff]  ;;  %v54_v13 = vld [vmem:[#allocation4 + $0x20] sm:$0xff]  ;;  %v48_v15 = vld [vmem:[#allocation2] sm:$0xff]  ;;  %vm1271_vm5 = vcmask 785408  }
  0x29   :  { %1474 = vmatprep.subr.bf16.mxu0 %v1473_v5  ;;  %v55_v14 = vld [vmem:[#allocation4 + $0x28] sm:$0xff]  ;;  %1487 = vmatpush3.bf16.msra.mxu1 %v1760_v9  ;;  %v1769_v16 = vpack.c.bf16 %v148_v12, %v147_v11  ;;  %v49_v18 = vld [vmem:[#allocation2 + $0x8] sm:$0xff]  ;;  %v1793_v19 = vld [vmem:[%s1978_s4] ss:$0 sm:$0xff]  ;;  %s1696_s4 = smov 32  }
  0x2a   :  { %1476 = vmatpush3.bf16.msra.mxu0 %v1473_v5  ;;  %1488 = vmatprep.subr.bf16.mxu1 %v1691_v0  ;;  %v1481_v17 = vpack.c.bf16 %v55_v14, %v54_v13  ;;  %v1294_v26 = vld [vmem:[%s1977_s3] ss:$0 sm:$0xff]  ;;  %s1695_s3 = smov 96  }
  0x2b   :  { %1478 = vmatprep.subr.bf16.mxu0 %v1477_v10  ;;  %1382 = vmatprep.mubr.msk.f32.mxu0 %vm63_vm1, %v48_v15 }
  0x2d   :  { %1490 = vmatpush3.bf16.msra.mxu1 %v1769_v16 }
  0x2e   :  { %1480 = vmatpush3.bf16.msra.mxu0 %v1477_v10  ;;  %1491 = vmatprep.subr.bf16.mxu1 %v1691_v0 }
  0x2f   :  { %1482 = vmatprep.subr.bf16.mxu0 %v1481_v17 }
  0x30   :  { %1394 = vmatmul.mubr.f32.vlgmr.msra.gmra.mrb[0].mxu1 %v1693_v1 }
  0x31   :  { %1493 = vmatpush3.bf16.msra.mxu1 %v1760_v9  ;;  %1404 = vmatprep.mubr.msk.f32.mxu1 %vm1692_vm0, %v1693_v1 }
  0x32   :  { %1484 = vmatpush3.bf16.msra.mxu0 %v1481_v17  ;;  %1494 = vmatprep.subr.bf16.mxu1 %v1691_v0 }
  0x33   :  { %1497 = vmatprep.subr.bf16.mxu0 %v1691_v0 }
  0x35   :  { %1383 = vmatmul.mubr.msk.f32.vlgmr.msra.gmra.mrb[0].mxu0 %vm63_vm1, %v49_v18  ;;  %1496 = vmatpush3.bf16.msra.mxu1 %v1769_v16 }
  0x36   :  { %1499 = vmatpush3.bf16.msra.mxu0 %v1760_v9  ;;  %1415 = vmatprep.mubr.msk.f32.mxu0 %vm1692_vm0, %v1693_v1 }
  0x37   :  { %1500 = vmatprep.subr.bf16.mxu0 %v1691_v0  ;;  %1503 = vmatprep.subr.bf16.mxu1 %v1691_v0 }
  0x3a   :  { %1502 = vmatpush3.bf16.msra.mxu0 %v1769_v16 }
  0x3b   :  { %1509 = vmatprep.subr.bf16.mxu0 %v1691_v0 }
 0x103   :  { %v226_v20 = vpop.f32.mrb[0].mxu1 }
 0x104   :  { %v227_v21 = vadd.f32 %v1793_v19, %v226_v20  ;;  %v1395_v22 = vpop.f32.mrb[1].mxu1 }
 0x106   :  { %v231_v23 = vrot.slane %v227_v21, 1 }
 0x108   :  { %v1384_v24 = vpop.f32.mrb[0].mxu0  ;;  %250 = vrot.lane.b32.xlu0 %v231_v23, %s1694_s26 }
 0x109   :  { %v136_v25 = vpop.f32.mrb[1].mxu0  ;;  %v1801_v27 = vadd.f32 %v1384_v24, %v1294_v26 }
 0x10a   :  { %v1803_v28 = vadd.f32 %v1294_v26, %v136_v25 }
 0x10b   :  { %v235_v29 = vadd.f32 %v231_v23, %v1801_v27 }
 0x10c   :  { %248 = vrot.lane.b32.xlu0 %v227_v21, %s1694_s26  ;;  %v234_v31 = vadd.f32 %v227_v21, %v1803_v28 }
 0x10d   :  { %v1299_v30 = vmul.f32 -1.442695, %v235_v29 }
 0x10e   :  { %v1298_v32 = vmul.f32 -1.442695, %v234_v31 }
 0x10f   :  { %1543 = vpow2.f32 %v1299_v30 }
 0x110   :  { %1545 = vpow2.f32 %v1298_v32 }
 0x119   :  { %v1544_v33 = vpop.eup %1543 }
 0x11a   :  { %v243_v34 = vadd.f32 1.0, %v1544_v33  ;;  %v1546_v35 = vpop.eup %1545 }
 0x11b   :  { %v242_v36 = vadd.f32 1.0, %v1546_v35 }
 0x11c   :  { %1547 = vrcp.f32 %v243_v34 }
 0x11d   :  { %1549 = vrcp.f32 %v242_v36 }
 0x126   :  { %v1548_v37 = vpop.eup %1547 }
 0x127   :  { %v1550_v40 = vpop.eup %1549  ;;  %v269_v49 = vsub.f32 1.0, %v1548_v37  ;;  %v281_v51 = vmul.f32 0.0, %v1548_v37 }
 0x128   :  { %v268_v54 = vsub.f32 1.0, %v1550_v40  ;;  %v280_v56 = vmul.f32 0.0, %v1550_v40 }
 0x17a   :  { %v251_v38 = vpop.permute.xlu0 %250 }
 0x17b   :  { %v255_v39 = vmul.f32 %v1548_v37, %v251_v38 }
 0x17d   :  { %260 = vrot.lane.b32.xlu1 %v255_v39, %s1694_s26 }
 0x17e   :  { %v249_v41 = vpop.permute.xlu0 %248 }
 0x17f   :  { %v254_v42 = vmul.f32 %v1550_v40, %v249_v41 }
 0x181   :  { %258 = vrot.lane.b32.xlu1 %v254_v42, %s1694_s26 }
 0x1ef   :  { %v261_v43 = vpop.permute.xlu1 %260 }
 0x1f0   :  { %v265_v44 = vadd.f32 %v261_v43, %v1801_v27 }
 0x1f2   :  { %1551 = vtanh.f32 %v265_v44 }
 0x1f3   :  { %v259_v45 = vpop.permute.xlu1 %258 }
 0x1f4   :  { %v264_v46 = vadd.f32 %v259_v45, %v1803_v28 }
 0x1f6   :  { %1553 = vtanh.f32 %v264_v46 }
 0x1fc   :  { %v1552_v47 = vpop.eup %1551 }
 0x1fd   :  { %274 = vrot.lane.b32.xlu0 %v1552_v47, %s1695_s3 }
 0x200   :  { %v1554_v48 = vpop.eup %1553 }
 0x201   :  { %272 = vrot.lane.b32.xlu1 %v1554_v48, %s1695_s3 }
 0x26f   :  { %v275_v50 = vpop.permute.xlu0 %274 }
 0x270   :  { %v279_v52 = vmul.f32 %v275_v50, %v269_v49 }
 0x272   :  { %v1813_v53 = vadd.f32 %v281_v51, %v279_v52 }
 0x273   :  { %v273_v55 = vpop.permute.xlu1 %272 }
 0x274   :  { %v278_v57 = vmul.f32 %v273_v55, %v268_v54  ;;  %v286_v58 = vrot.slane %v1813_v53, 7 }
 0x276   :  { %v282_v59 = vadd.f32 %v280_v56, %v278_v57 }
 0x278   :  { %v288_v60 = vsel %vm287_vm2, %v286_v58, %v282_v59  ;;  %v413_v30 = vrot.slane %v282_v59, 7 }
 0x279   :  { %289 = vrot.lane.b32.xlu0 %v288_v60, %s1695_s3 }
 0x2eb   :  { %v1818_v61 = vpop.permute.xlu0 %289 }
 0x2ec   :  { %1405 = vmatmul.mubr.msk.f32.vlgmr.msra.gmra.mrb[2].mxu1 %vm156_vm3, %v1818_v61 }
 0x2ed   :  { %1505 = vmatpush3.bf16.msra.mxu1 %v1760_v9  ;;  %1426 = vmatprep.mubr.msk.f32.mxu1 %vm1692_vm0, %v1693_v1 }
 0x2ee   :  { %1506 = vmatprep.subr.bf16.mxu1 %v1691_v0 }
 0x2f1   :  { %1508 = vmatpush3.bf16.msra.mxu1 %v1769_v16 }
 0x2f2   :  { %1515 = vmatprep.subr.bf16.mxu1 %v1691_v0 }
 0x3bf   :  { %v359_v62 = vpop.f32.mrb[2].mxu1 }
 0x3c0   :  { %v360_v63 = vadd.f32 %v1793_v19, %v359_v62  ;;  %v1406_v2 = vpop.f32.mrb[3].mxu1 }
 0x3c2   :  { %383 = vrot.lane.b32.xlu0 %v360_v63, %s1694_s26  ;;  %v364_v3 = vrot.slane %v360_v63, 7  ;;  %v368_v4 = vadd.f32 %v360_v63, %v1801_v27 }
 0x3c4   :  { %381 = vrot.lane.b32.xlu1 %v364_v3, %s1694_s26  ;;  %v367_v5 = vadd.f32 %v364_v3, %v1803_v28  ;;  %v1302_v6 = vmul.f32 -1.442695, %v368_v4 }
 0x3c6   :  { %v1301_v7 = vmul.f32 -1.442695, %v367_v5  ;;  %1555 = vpow2.f32 %v1302_v6 }
 0x3c8   :  { %1557 = vpow2.f32 %v1301_v7 }
 0x3d0   :  { %v1556_v8 = vpop.eup %1555 }
 0x3d1   :  { %v376_v11 = vadd.f32 1.0, %v1556_v8 }
 0x3d2   :  { %v1558_v10 = vpop.eup %1557 }
 0x3d3   :  { %v375_v12 = vadd.f32 1.0, %v1558_v10  ;;  %1559 = vrcp.f32 %v376_v11 }
 0x3d5   :  { %1561 = vrcp.f32 %v375_v12 }
 0x3dd   :  { %v1560_v13 = vpop.eup %1559 }
 0x3de   :  { %v402_v31 = vsub.f32 1.0, %v1560_v13  ;;  %v417_v37 = vmul.f32 %v1560_v13, %v286_v58 }
 0x3df   :  { %v1562_v17 = vpop.eup %1561 }
 0x3e0   :  { %v401_v32 = vsub.f32 1.0, %v1562_v17  ;;  %v416_v35 = vmul.f32 %v1562_v17, %v413_v30 }
 0x434   :  { %v384_v14 = vpop.permute.xlu0 %383 }
 0x435   :  { %v388_v15 = vmul.f32 %v1560_v13, %v384_v14 }
 0x436   :  { %v382_v18 = vpop.permute.xlu1 %381 }
 0x437   :  { %v387_v20 = vmul.f32 %v1562_v17, %v382_v18  ;;  %393 = vrot.lane.b32.xlu0 %v388_v15, %s1694_s26 }
 0x439   :  { %391 = vrot.lane.b32.xlu1 %v387_v20, %s1694_s26 }
 0x4a9   :  { %v394_v21 = vpop.permute.xlu0 %393 }
 0x4aa   :  { %v398_v22 = vadd.f32 %v394_v21, %v1801_v27 }
 0x4ab   :  { %v392_v23 = vpop.permute.xlu1 %391 }
 0x4ac   :  { %1563 = vtanh.f32 %v398_v22  ;;  %v397_v24 = vadd.f32 %v392_v23, %v1803_v28 }
 0x4ae   :  { %1565 = vtanh.f32 %v397_v24 }
 0x4b6   :  { %v1564_v25 = vpop.eup %1563 }
 0x4b7   :  { %407 = vrot.lane.b32.xlu0 %v1564_v25, %s1695_s3 }
 0x4b8   :  { %v1566_v26 = vpop.eup %1565 }
 0x4b9   :  { %405 = vrot.lane.b32.xlu1 %v1566_v26, %s1695_s3 }
 0x529   :  { %v408_v29 = vpop.permute.xlu0 %407 }
 0x52a   :  { %v412_v34 = vmul.f32 %v408_v29, %v402_v31 }
 0x52b   :  { %v406_v33 = vpop.permute.xlu1 %405 }
 0x52c   :  { %v411_v36 = vmul.f32 %v406_v33, %v401_v32  ;;  %v419_v39 = vadd.f32 %v417_v37, %v412_v34 }
 0x52e   :  { %v418_v38 = vadd.f32 %v416_v35, %v411_v36  ;;  %v550_v7 = vrot.slane %v419_v39, 7 }
 0x530   :  { %v422_v40 = vrot.slane %v418_v38, 1  ;;  %v549_v10 = vrot.slane %v418_v38, 7 }
 0x532   :  { %v1840_v41 = vsel %vm287_vm2, %v419_v39, %v422_v40 }
 0x533   :  { %424 = vrot.lane.b32.xlu1 %v1840_v41, %s1695_s3 }
 0x5a5   :  { %v425_v42 = vpop.permute.xlu1 %424 }
 0x5a6   :  { %1416 = vmatmul.mubr.msk.f32.vlgmr.msra.gmra.mrb[2].mxu0 %vm156_vm3, %v425_v42 }
 0x5a7   :  { %1511 = vmatpush3.bf16.msra.mxu0 %v1760_v9  ;;  %1437 = vmatprep.mubr.msk.f32.mxu0 %vm1692_vm0, %v1693_v1 }
 0x5a8   :  { %1512 = vmatprep.subr.bf16.mxu0 %v1691_v0 }
 0x5ab   :  { %1514 = vmatpush3.bf16.msra.mxu0 %v1769_v16 }
 0x5ac   :  { %1521 = vmatprep.subr.bf16.mxu0 %v1691_v0 }
 0x679   :  { %v494_v43 = vpop.f32.mrb[2].mxu0 }
 0x67a   :  { %v495_v44 = vadd.f32 %v1793_v19, %v494_v43  ;;  %v1417_v45 = vpop.f32.mrb[3].mxu0 }
 0x67c   :  { %v499_v46 = vrot.slane %v495_v44, 6  ;;  %v500_v47 = vrot.slane %v495_v44, 7 }
 0x67e   :  { %519 = vrot.lane.b32.xlu1 %v500_v47, %s1694_s26  ;;  %517 = vrot.lane.b32.xlu0 %v499_v46, %s1694_s26  ;;  %v503_v48 = vadd.f32 %v499_v46, %v1803_v28  ;;  %v504_v49 = vadd.f32 %v500_v47, %v1801_v27 }
 0x680   :  { %v1304_v50 = vmul.f32 -1.442695, %v503_v48  ;;  %v1305_v51 = vmul.f32 -1.442695, %v504_v49 }
 0x682   :  { %1567 = vpow2.f32 %v1304_v50 }
 0x683   :  { %1569 = vpow2.f32 %v1305_v51 }
 0x68c   :  { %v1568_v52 = vpop.eup %1567 }
 0x68d   :  { %v1570_v53 = vpop.eup %1569  ;;  %v511_v54 = vadd.f32 1.0, %v1568_v52 }
 0x68e   :  { %v512_v55 = vadd.f32 1.0, %v1570_v53 }
 0x68f   :  { %1571 = vrcp.f32 %v511_v54 }
 0x690   :  { %1573 = vrcp.f32 %v512_v55 }
 0x699   :  { %v1572_v56 = vpop.eup %1571 }
 0x69a   :  { %v1574_v57 = vpop.eup %1573  ;;  %v537_v12 = vsub.f32 1.0, %v1572_v56  ;;  %v553_v17 = vmul.f32 %v1572_v56, %v549_v10 }
 0x69b   :  { %v538_v8 = vsub.f32 1.0, %v1574_v57  ;;  %v554_v13 = vmul.f32 %v1574_v57, %v550_v7 }
 0x6f0   :  { %v520_v58 = vpop.permute.xlu1 %519  ;;  %v518_v59 = vpop.permute.xlu0 %517 }
 0x6f1   :  { %v524_v60 = vmul.f32 %v1574_v57, %v520_v58  ;;  %v523_v62 = vmul.f32 %v1572_v56, %v518_v59 }
 0x6f3   :  { %529 = vrot.lane.b32.xlu1 %v524_v60, %s1694_s26  ;;  %527 = vrot.lane.b32.xlu0 %v523_v62, %s1694_s26 }
 0x765   :  { %v530_v63 = vpop.permute.xlu1 %529  ;;  %v528_v2 = vpop.permute.xlu0 %527 }
 0x766   :  { %v534_v3 = vadd.f32 %v530_v63, %v1801_v27  ;;  %v533_v4 = vadd.f32 %v528_v2, %v1803_v28 }
 0x768   :  { %1575 = vtanh.f32 %v534_v3 }
 0x769   :  { %1577 = vtanh.f32 %v533_v4 }
 0x772   :  { %v1576_v5 = vpop.eup %1575 }
 0x773   :  { %v1578_v6 = vpop.eup %1577  ;;  %543 = vrot.lane.b32.xlu1 %v1576_v5, %s1695_s3 }
 0x774   :  { %541 = vrot.lane.b32.xlu0 %v1578_v6, %s1695_s3 }
 0x7e5   :  { %v544_v11 = vpop.permute.xlu1 %543 }
 0x7e6   :  { %v548_v14 = vmul.f32 %v544_v11, %v538_v8  ;;  %v542_v15 = vpop.permute.xlu0 %541 }
 0x7e7   :  { %v547_v18 = vmul.f32 %v542_v15, %v537_v12 }
 0x7e8   :  { %v556_v20 = vadd.f32 %v554_v13, %v548_v14 }
 0x7e9   :  { %v555_v21 = vadd.f32 %v553_v17, %v547_v18 }
 0x7ea   :  { %v560_v22 = vrot.slane %v556_v20, 1  ;;  %v688_v54 = vrot.slane %v556_v20, 7 }
 0x7eb   :  { %v559_v23 = vrot.slane %v555_v21, 2  ;;  %v687_v56 = vrot.slane %v555_v21, 7 }
 0x7ed   :  { %v1863_v24 = vsel %vm287_vm2, %v560_v22, %v559_v23 }
 0x7ee   :  { %562 = vrot.lane.b32.xlu0 %v1863_v24, %s1695_s3 }
 0x860   :  { %v563_v25 = vpop.permute.xlu0 %562 }
 0x861   :  { %1427 = vmatmul.mubr.msk.f32.vlgmr.msra.gmra.mrb[4].mxu1 %vm156_vm3, %v563_v25 }
 0x862   :  { %1517 = vmatpush3.bf16.msra.mxu1 %v1760_v9  ;;  %1448 = vmatprep.mubr.msk.f32.mxu1 %vm1692_vm0, %v1693_v1 }
 0x863   :  { %1518 = vmatprep.subr.bf16.mxu1 %v1691_v0 }
 0x866   :  { %1520 = vmatpush3.bf16.msra.mxu1 %v1769_v16 }
 0x867   :  { %1527 = vmatprep.subr.bf16.mxu1 %v1691_v0 }
 0x934   :  { %v632_v26 = vpop.f32.mrb[4].mxu1 }
 0x935   :  { %v633_v29 = vadd.f32 %v1793_v19, %v632_v26  ;;  %v1428_v30 = vpop.f32.mrb[5].mxu1 }
 0x937   :  { %v637_v31 = vrot.slane %v633_v29, 5  ;;  %v638_v32 = vrot.slane %v633_v29, 6 }
 0x939   :  { %657 = vrot.lane.b32.xlu0 %v638_v32, %s1694_s26  ;;  %655 = vrot.lane.b32.xlu1 %v637_v31, %s1694_s26  ;;  %v641_v33 = vadd.f32 %v637_v31, %v1803_v28  ;;  %v642_v34 = vadd.f32 %v638_v32, %v1801_v27 }
 0x93b   :  { %v1307_v35 = vmul.f32 -1.442695, %v641_v33  ;;  %v1308_v36 = vmul.f32 -1.442695, %v642_v34 }
 0x93d   :  { %1579 = vpow2.f32 %v1307_v35 }
 0x93e   :  { %1581 = vpow2.f32 %v1308_v36 }
 0x947   :  { %v1580_v37 = vpop.eup %1579 }
 0x948   :  { %v1582_v38 = vpop.eup %1581  ;;  %v649_v39 = vadd.f32 1.0, %v1580_v37 }
 0x949   :  { %v650_v40 = vadd.f32 1.0, %v1582_v38 }
 0x94a   :  { %1583 = vrcp.f32 %v649_v39 }
 0x94b   :  { %1585 = vrcp.f32 %v650_v40 }
 0x954   :  { %v1584_v42 = vpop.eup %1583 }
 0x955   :  { %v1586_v43 = vpop.eup %1585  ;;  %v675_v58 = vsub.f32 1.0, %v1584_v42  ;;  %v691_v63 = vmul.f32 %v1584_v42, %v687_v56 }
 0x956   :  { %v676_v55 = vsub.f32 1.0, %v1586_v43  ;;  %v692_v59 = vmul.f32 %v1586_v43, %v688_v54 }
 0x9ab   :  { %v658_v44 = vpop.permute.xlu0 %657  ;;  %v656_v45 = vpop.permute.xlu1 %655 }
 0x9ac   :  { %v662_v46 = vmul.f32 %v1586_v43, %v658_v44  ;;  %v661_v47 = vmul.f32 %v1584_v42, %v656_v45 }
 0x9ae   :  { %667 = vrot.lane.b32.xlu0 %v662_v46, %s1694_s26  ;;  %665 = vrot.lane.b32.xlu1 %v661_v47, %s1694_s26 }
 0xa20   :  { %v668_v48 = vpop.permute.xlu0 %667  ;;  %v666_v49 = vpop.permute.xlu1 %665 }
 0xa21   :  { %v672_v50 = vadd.f32 %v668_v48, %v1801_v27  ;;  %v671_v51 = vadd.f32 %v666_v49, %v1803_v28 }
 0xa23   :  { %1587 = vtanh.f32 %v672_v50 }
 0xa24   :  { %1589 = vtanh.f32 %v671_v51 }
 0xa2d   :  { %v1588_v52 = vpop.eup %1587 }
 0xa2e   :  { %v1590_v53 = vpop.eup %1589  ;;  %681 = vrot.lane.b32.xlu0 %v1588_v52, %s1695_s3 }
 0xa2f   :  { %679 = vrot.lane.b32.xlu1 %v1590_v53, %s1695_s3 }
 0xaa0   :  { %v682_v57 = vpop.permute.xlu0 %681 }
 0xaa1   :  { %v686_v60 = vmul.f32 %v682_v57, %v676_v55  ;;  %v680_v62 = vpop.permute.xlu1 %679 }
 0xaa2   :  { %v685_v2 = vmul.f32 %v680_v62, %v675_v58 }
 0xaa3   :  { %v694_v3 = vadd.f32 %v692_v59, %v686_v60 }
 0xaa4   :  { %v693_v4 = vadd.f32 %v691_v63, %v685_v2 }
 0xaa5   :  { %v698_v5 = vrot.slane %v694_v3, 2  ;;  %v826_v40 = vrot.slane %v694_v3, 7 }
 0xaa6   :  { %v697_v6 = vrot.slane %v693_v4, 3  ;;  %v825_v43 = vrot.slane %v693_v4, 7 }
 0xaa8   :  { %v1886_v7 = vsel %vm287_vm2, %v698_v5, %v697_v6 }
 0xaa9   :  { %700 = vrot.lane.b32.xlu1 %v1886_v7, %s1695_s3 }
 0xb1b   :  { %v701_v8 = vpop.permute.xlu1 %700 }
 0xb1c   :  { %1438 = vmatmul.mubr.msk.f32.vlgmr.msra.gmra.mrb[4].mxu0 %vm156_vm3, %v701_v8 }
 0xb1d   :  { %1523 = vmatpush3.bf16.msra.mxu0 %v1760_v9  ;;  %1459 = vmatprep.mubr.msk.f32.mxu0 %vm1692_vm0, %v1693_v1 }
 0xb1e   :  { %1524 = vmatprep.subr.bf16.mxu0 %v1691_v0 }
 0xb21   :  { %1526 = vmatpush3.bf16.msra.mxu0 %v1769_v16 }
 0xbef   :  { %v770_v10 = vpop.f32.mrb[4].mxu0 }
 0xbf0   :  { %v771_v11 = vadd.f32 %v1793_v19, %v770_v10  ;;  %v1439_v12 = vpop.f32.mrb[5].mxu0 }
 0xbf2   :  { %v775_v13 = vrot.slane %v771_v11, 4  ;;  %v776_v14 = vrot.slane %v771_v11, 5 }
 0xbf4   :  { %795 = vrot.lane.b32.xlu1 %v776_v14, %s1694_s26  ;;  %793 = vrot.lane.b32.xlu0 %v775_v13, %s1694_s26  ;;  %v779_v15 = vadd.f32 %v775_v13, %v1803_v28  ;;  %v780_v17 = vadd.f32 %v776_v14, %v1801_v27 }
 0xbf6   :  { %v1310_v18 = vmul.f32 -1.442695, %v779_v15  ;;  %v1311_v20 = vmul.f32 -1.442695, %v780_v17 }
 0xbf8   :  { %1591 = vpow2.f32 %v1310_v18 }
 0xbf9   :  { %1593 = vpow2.f32 %v1311_v20 }
 0xc02   :  { %v1592_v21 = vpop.eup %1591 }
 0xc03   :  { %v1594_v22 = vpop.eup %1593  ;;  %v787_v23 = vadd.f32 1.0, %v1592_v21 }
 0xc04   :  { %v788_v25 = vadd.f32 1.0, %v1594_v22 }
 0xc05   :  { %1595 = vrcp.f32 %v787_v23 }
 0xc06   :  { %1597 = vrcp.f32 %v788_v25 }
 0xc0f   :  { %v1596_v26 = vpop.eup %1595 }
 0xc10   :  { %v1598_v29 = vpop.eup %1597  ;;  %v813_v45 = vsub.f32 1.0, %v1596_v26  ;;  %v829_v49 = vmul.f32 %v1596_v26, %v825_v43 }
 0xc11   :  { %v814_v42 = vsub.f32 1.0, %v1598_v29  ;;  %v830_v46 = vmul.f32 %v1598_v29, %v826_v40 }
 0xc66   :  { %v796_v30 = vpop.permute.xlu1 %795  ;;  %v794_v31 = vpop.permute.xlu0 %793 }
 0xc67   :  { %v800_v32 = vmul.f32 %v1598_v29, %v796_v30  ;;  %v799_v33 = vmul.f32 %v1596_v26, %v794_v31 }
 0xc69   :  { %805 = vrot.lane.b32.xlu1 %v800_v32, %s1694_s26  ;;  %803 = vrot.lane.b32.xlu0 %v799_v33, %s1694_s26 }
 0xcdb   :  { %v806_v34 = vpop.permute.xlu1 %805  ;;  %v804_v35 = vpop.permute.xlu0 %803 }
 0xcdc   :  { %v810_v36 = vadd.f32 %v806_v34, %v1801_v27  ;;  %v809_v37 = vadd.f32 %v804_v35, %v1803_v28 }
 0xcde   :  { %1599 = vtanh.f32 %v810_v36 }
 0xcdf   :  { %1601 = vtanh.f32 %v809_v37 }
 0xce8   :  { %v1600_v38 = vpop.eup %1599 }
 0xce9   :  { %v1602_v39 = vpop.eup %1601  ;;  %819 = vrot.lane.b32.xlu1 %v1600_v38, %s1695_s3 }
 0xcea   :  { %817 = vrot.lane.b32.xlu0 %v1602_v39, %s1695_s3 }
 0xd5b   :  { %v820_v44 = vpop.permute.xlu1 %819 }
 0xd5c   :  { %v824_v47 = vmul.f32 %v820_v44, %v814_v42  ;;  %v818_v48 = vpop.permute.xlu0 %817 }
 0xd5d   :  { %v823_v50 = vmul.f32 %v818_v48, %v813_v45 }
 0xd5e   :  { %v832_v51 = vadd.f32 %v830_v46, %v824_v47 }
 0xd5f   :  { %v831_v52 = vadd.f32 %v829_v49, %v823_v50 }
 0xd60   :  { %v836_v53 = vrot.slane %v832_v51, 3  ;;  %v964_v21 = vrot.slane %v832_v51, 7 }
 0xd61   :  { %v835_v54 = vrot.slane %v831_v52, 4  ;;  %v963_v23 = vrot.slane %v831_v52, 7 }
 0xd63   :  { %v837_v55 = vsel %vm287_vm2, %v836_v53, %v835_v54 }
 0xd64   :  { %838 = vrot.lane.b32.xlu0 %v837_v55, %s1695_s3 }
 0xdd6   :  { %v1909_v56 = vpop.permute.xlu0 %838 }
 0xdd7   :  { %1449 = vmatmul.mubr.msk.f32.vlgmr.msra.gmra.mrb[6].mxu1 %vm156_vm3, %v1909_v56 }
 0xdd8   :  { %1529 = vmatpush3.bf16.msra.mxu1 %v1760_v9  ;;  %1470 = vmatprep.mubr.msk.f32.mxu1 %vm1692_vm0, %v1693_v1 }
 0xdd9   :  { %1530 = vmatprep.subr.bf16.mxu1 %v1691_v0 }
 0xddc   :  { %1532 = vmatpush3.bf16.msra.mxu1 %v1769_v16 }
 0xeaa   :  { %v908_v57 = vpop.f32.mrb[6].mxu1 }
 0xeab   :  { %v909_v58 = vadd.f32 %v1793_v19, %v908_v57  ;;  %v1450_v59 = vpop.f32.mrb[7].mxu1 }
 0xead   :  { %v913_v60 = vrot.slane %v909_v58, 3  ;;  %v914_v62 = vrot.slane %v909_v58, 4 }
 0xeaf   :  { %933 = vrot.lane.b32.xlu0 %v914_v62, %s1694_s26  ;;  %931 = vrot.lane.b32.xlu1 %v913_v60, %s1694_s26  ;;  %v917_v63 = vadd.f32 %v913_v60, %v1803_v28  ;;  %v918_v9 = vadd.f32 %v914_v62, %v1801_v27 }
 0xeb1   :  { %v1313_v2 = vmul.f32 -1.442695, %v917_v63  ;;  %v1314_v1 = vmul.f32 -1.442695, %v918_v9 }
 0xeb3   :  { %1603 = vpow2.f32 %v1313_v2 }
 0xeb4   :  { %1605 = vpow2.f32 %v1314_v1 }
 0xebd   :  { %v1604_v0 = vpop.eup %1603 }
 0xebe   :  { %v1606_v16 = vpop.eup %1605  ;;  %v925_v3 = vadd.f32 1.0, %v1604_v0 }
 0xebf   :  { %v926_v4 = vadd.f32 1.0, %v1606_v16 }
 0xec0   :  { %1607 = vrcp.f32 %v925_v3 }
 0xec1   :  { %1609 = vrcp.f32 %v926_v4 }
 0xeca   :  { %v1608_v5 = vpop.eup %1607 }
 0xecb   :  { %v1610_v6 = vpop.eup %1609  ;;  %v951_v26 = vsub.f32 1.0, %v1608_v5  ;;  %v967_v32 = vmul.f32 %v1608_v5, %v963_v23 }
 0xecc   :  { %v952_v22 = vsub.f32 1.0, %v1610_v6  ;;  %v968_v29 = vmul.f32 %v1610_v6, %v964_v21 }
 0xf21   :  { %v934_v8 = vpop.permute.xlu0 %933  ;;  %v932_v10 = vpop.permute.xlu1 %931 }
 0xf22   :  { %v938_v11 = vmul.f32 %v1610_v6, %v934_v8  ;;  %v937_v12 = vmul.f32 %v1608_v5, %v932_v10 }
 0xf24   :  { %943 = vrot.lane.b32.xlu0 %v938_v11, %s1694_s26  ;;  %941 = vrot.lane.b32.xlu1 %v937_v12, %s1694_s26 }
 0xf96   :  { %v944_v13 = vpop.permute.xlu0 %943  ;;  %v942_v14 = vpop.permute.xlu1 %941 }
 0xf97   :  { %v948_v15 = vadd.f32 %v944_v13, %v1801_v27  ;;  %v947_v17 = vadd.f32 %v942_v14, %v1803_v28 }
 0xf99   :  { %1611 = vtanh.f32 %v948_v15 }
 0xf9a   :  { %1613 = vtanh.f32 %v947_v17 }
 0xfa3   :  { %v1612_v18 = vpop.eup %1611 }
 0xfa4   :  { %v1614_v20 = vpop.eup %1613  ;;  %957 = vrot.lane.b32.xlu0 %v1612_v18, %s1695_s3 }
 0xfa5   :  { %955 = vrot.lane.b32.xlu1 %v1614_v20, %s1695_s3 }
0x1016   :  { %v958_v25 = vpop.permute.xlu0 %957 }
0x1017   :  { %v962_v30 = vmul.f32 %v958_v25, %v952_v22  ;;  %v956_v31 = vpop.permute.xlu1 %955 }
0x1018   :  { %v961_v33 = vmul.f32 %v956_v31, %v951_v26 }
0x1019   :  { %v970_v34 = vadd.f32 %v968_v29, %v962_v30 }
0x101a   :  { %v969_v35 = vadd.f32 %v967_v32, %v961_v33 }
0x101b   :  { %v974_v36 = vrot.slane %v970_v34, 4  ;;  %v1102_v16 = vrot.slane %v970_v34, 7 }
0x101c   :  { %v973_v37 = vrot.slane %v969_v35, 5  ;;  %v1101_v4 = vrot.slane %v969_v35, 7 }
0x101e   :  { %v1930_v38 = vsel %vm287_vm2, %v974_v36, %v973_v37 }
0x101f   :  { %976 = vrot.lane.b32.xlu1 %v1930_v38, %s1695_s3 }
0x1091   :  { %v977_v39 = vpop.permute.xlu1 %976 }
0x1092   :  { %1460 = vmatmul.mubr.msk.f32.vlgmr.msra.gmra.mrb[6].mxu0 %vm156_vm3, %v977_v39 }
0x1165   :  { %v1046_v40 = vpop.f32.mrb[6].mxu0 }
0x1166   :  { %v1047_v42 = vadd.f32 %v1793_v19, %v1046_v40  ;;  %v1461_v43 = vpop.f32.mrb[7].mxu0 }
0x1168   :  { %v1051_v44 = vrot.slane %v1047_v42, 2  ;;  %v1052_v45 = vrot.slane %v1047_v42, 3 }
0x116a   :  { %1071 = vrot.lane.b32.xlu1 %v1052_v45, %s1694_s26  ;;  %1069 = vrot.lane.b32.xlu0 %v1051_v44, %s1694_s26  ;;  %v1055_v46 = vadd.f32 %v1051_v44, %v1803_v28  ;;  %v1056_v47 = vadd.f32 %v1052_v45, %v1801_v27 }
0x116c   :  { %v1316_v48 = vmul.f32 -1.442695, %v1055_v46  ;;  %v1317_v49 = vmul.f32 -1.442695, %v1056_v47 }
0x116e   :  { %1615 = vpow2.f32 %v1316_v48 }
0x116f   :  { %1617 = vpow2.f32 %v1317_v49 }
0x1178   :  { %v1616_v50 = vpop.eup %1615 }
0x1179   :  { %v1618_v51 = vpop.eup %1617  ;;  %v1063_v52 = vadd.f32 1.0, %v1616_v50 }
0x117a   :  { %v1064_v53 = vadd.f32 1.0, %v1618_v51 }
0x117b   :  { %1619 = vrcp.f32 %v1063_v52 }
0x117c   :  { %1621 = vrcp.f32 %v1064_v53 }
0x1185   :  { %v1620_v54 = vpop.eup %1619 }
0x1186   :  { %v1622_v55 = vpop.eup %1621  ;;  %v1089_v6 = vsub.f32 1.0, %v1620_v54  ;;  %v1105_v12 = vmul.f32 %v1620_v54, %v1101_v4 }
0x1187   :  { %v1090_v3 = vsub.f32 1.0, %v1622_v55  ;;  %v1106_v8 = vmul.f32 %v1622_v55, %v1102_v16  ;;  %v1268_v16 = vsel %vm156_vm3, %v1818_v61, %v1840_v41 }
0x11dc   :  { %v1072_v57 = vpop.permute.xlu1 %1071  ;;  %v1070_v58 = vpop.permute.xlu0 %1069 }
0x11dd   :  { %v1076_v59 = vmul.f32 %v1622_v55, %v1072_v57  ;;  %v1075_v60 = vmul.f32 %v1620_v54, %v1070_v58 }
0x11df   :  { %1081 = vrot.lane.b32.xlu1 %v1076_v59, %s1694_s26  ;;  %1079 = vrot.lane.b32.xlu0 %v1075_v60, %s1694_s26 }
0x1251   :  { %v1082_v62 = vpop.permute.xlu1 %1081  ;;  %v1080_v63 = vpop.permute.xlu0 %1079 }
0x1252   :  { %v1086_v9 = vadd.f32 %v1082_v62, %v1801_v27  ;;  %v1085_v2 = vadd.f32 %v1080_v63, %v1803_v28 }
0x1254   :  { %1623 = vtanh.f32 %v1086_v9 }
0x1255   :  { %1625 = vtanh.f32 %v1085_v2 }
0x125e   :  { %v1624_v1 = vpop.eup %1623 }
0x125f   :  { %v1626_v0 = vpop.eup %1625  ;;  %1095 = vrot.lane.b32.xlu1 %v1624_v1, %s1695_s3 }
0x1260   :  { %1093 = vrot.lane.b32.xlu0 %v1626_v0, %s1695_s3  ;;  %v1273_v0 = vsel %vm156_vm3, %v1909_v56, %v1930_v38 }
0x12d1   :  { %v1096_v5 = vpop.permute.xlu1 %1095 }
0x12d2   :  { %v1100_v10 = vmul.f32 %v1096_v5, %v1090_v3  ;;  %v1094_v11 = vpop.permute.xlu0 %1093 }
0x12d3   :  { %v1099_v13 = vmul.f32 %v1094_v11, %v1089_v6 }
0x12d4   :  { %v1108_v14 = vadd.f32 %v1106_v8, %v1100_v10 }
0x12d5   :  { %v1107_v15 = vadd.f32 %v1105_v12, %v1099_v13 }
0x12d6   :  { %v1112_v17 = vrot.slane %v1108_v14, 5  ;;  %v1240_v51 = vrot.slane %v1108_v14, 7 }
0x12d7   :  { %v1111_v18 = vrot.slane %v1107_v15, 6 }
0x12d9   :  { %v1113_v20 = vsel %vm287_vm2, %v1112_v17, %v1111_v18 }
0x12da   :  { %1114 = vrot.lane.b32.xlu0 %v1113_v20, %s1695_s3 }
0x134c   :  { %v1115_v21 = vpop.permute.xlu0 %1114 }
0x134d   :  { %1471 = vmatmul.mubr.msk.f32.vlgmr.msra.gmra.mrb[8].mxu1 %vm156_vm3, %v1115_v21 }
0x1420   :  { %v1184_v22 = vpop.f32.mrb[8].mxu1 }
0x1421   :  { %v1185_v23 = vadd.f32 %v1793_v19, %v1184_v22  ;;  %v1472_v25 = vpop.f32.mrb[9].mxu1 }
0x1423   :  { %v1189_v26 = vrot.slane %v1185_v23, 1  ;;  %v1190_v29 = vrot.slane %v1185_v23, 2 }
0x1425   :  { %1209 = vrot.lane.b32.xlu0 %v1190_v29, %s1694_s26  ;;  %1207 = vrot.lane.b32.xlu1 %v1189_v26, %s1694_s26  ;;  %v1193_v30 = vadd.f32 %v1189_v26, %v1803_v28  ;;  %v1194_v31 = vadd.f32 %v1190_v29, %v1801_v27 }
0x1427   :  { %v1319_v32 = vmul.f32 -1.442695, %v1193_v30  ;;  %v1320_v33 = vmul.f32 -1.442695, %v1194_v31 }
0x1429   :  { %1627 = vpow2.f32 %v1319_v32 }
0x142a   :  { %1629 = vpow2.f32 %v1320_v33 }
0x1433   :  { %v1628_v34 = vpop.eup %1627 }
0x1434   :  { %v1630_v35 = vpop.eup %1629  ;;  %v1201_v36 = vadd.f32 1.0, %v1628_v34 }
0x1435   :  { %v1202_v37 = vadd.f32 1.0, %v1630_v35 }
0x1436   :  { %1631 = vrcp.f32 %v1201_v36 }
0x1437   :  { %1633 = vrcp.f32 %v1202_v37 }
0x1440   :  { %v1632_v19 = vpop.eup %1631 }
0x1441   :  { %v1634_v39 = vpop.eup %1633 }
0x1442   :  { %v1228_v52 = vsub.f32 1.0, %v1634_v39  ;;  %v1244_v54 = vmul.f32 %v1634_v39, %v1240_v51 }
0x1497   :  { %v1210_v40 = vpop.permute.xlu0 %1209  ;;  %v1208_v42 = vpop.permute.xlu1 %1207 }
0x1498   :  { %v1214_v43 = vmul.f32 %v1634_v39, %v1210_v40  ;;  %v1213_v44 = vmul.f32 %v1632_v19, %v1208_v42 }
0x149a   :  { %1219 = vrot.lane.b32.xlu0 %v1214_v43, %s1694_s26  ;;  %1217 = vrot.lane.b32.xlu1 %v1213_v44, %s1694_s26 }
0x150c   :  { %v1220_v45 = vpop.permute.xlu0 %1219  ;;  %v1218_v46 = vpop.permute.xlu1 %1217 }
0x150d   :  { %v1224_v47 = vadd.f32 %v1220_v45, %v1801_v27  ;;  %v1223_v48 = vadd.f32 %v1218_v46, %v1803_v28  ;;  %v1239_v27 = vrot.slane %v1107_v15, 7  ;;  %v1227_v28 = vsub.f32 1.0, %v1632_v19 }
0x150f   :  { %1635 = vtanh.f32 %v1224_v47  ;;  %v1243_v58 = vmul.f32 %v1632_v19, %v1239_v27 }
0x1510   :  { %1637 = vtanh.f32 %v1223_v48 }
0x1519   :  { %v1636_v49 = vpop.eup %1635 }
0x151a   :  { %v1638_v50 = vpop.eup %1637  ;;  %1233 = vrot.lane.b32.xlu0 %v1636_v49, %s1695_s3 }
0x151b   :  { %1231 = vrot.lane.b32.xlu1 %v1638_v50, %s1695_s3 }
0x151e   :  { %1257 = vrot.lane.b32.xlu0 %v1113_v20, %s1696_s4 }
0x151f   :  { %1249 = vrot.lane.b32.xlu1 %v1863_v24, %s1696_s4 }
0x1523   :  { %1252 = vrot.lane.b32.xlu1 %v1886_v7, %s1694_s26 }
0x158c   :  { %v1234_v53 = vpop.permute.xlu0 %1233 }
0x158d   :  { %v1238_v55 = vmul.f32 %v1234_v53, %v1228_v52  ;;  %v1232_v57 = vpop.permute.xlu1 %1231 }
0x158e   :  { %v1237_v59 = vmul.f32 %v1232_v57, %v1227_v28 }
0x158f   :  { %v1246_v60 = vadd.f32 %v1244_v54, %v1238_v55 }
0x1590   :  { %v1245_v62 = vadd.f32 %v1243_v58, %v1237_v59  ;;  %v1258_v7 = vpop.permute.xlu0 %1257 }
0x1591   :  { %v1263_v63 = vrot.slane %v1246_v60, 6  ;;  %v1250_v24 = vpop.permute.xlu1 %1249  ;;  %v1274_v3 = vsel %vm1269_vm4, %v1273_v0, %v1258_v7 }
0x1592   :  { %v1262_v9 = vrot.slane %v1245_v62, 7  ;;  %v1270_v4 = vsel %vm1269_vm4, %v1268_v16, %v1250_v24 }
0x1594   :  { %v1264_v2 = vsel %vm287_vm2, %v1263_v63, %v1262_v9 }
0x1595   :  { %1265 = vrot.lane.b32.xlu0 %v1264_v2, %s1694_s26  ;;  %v1253_v1 = vpop.permute.xlu1 %1252 }
0x1596   :  { %v1272_v6 = vsel %vm1271_vm5, %v1270_v4, %v1253_v1 }
0x1607   :  { %v1266_v5 = vpop.permute.xlu0 %1265 }
0x1608   :  { %v1275_v8 = vsel %vm1271_vm5, %v1274_v3, %v1266_v5 }
0x1609   :  { %v1278_v10 = vcombine.low %v1272_v6, %v1275_v8 }
0x160b   :  { %1321 = vst.sshfl [vmem:[%s1979_s5] sm:$0x33 pattern:$0x76325410] %v1278_v10 }
0x160c   :  { %1292 = vsyncpa [#allocation3], 1 }
0x160d   :  { %1293 = vsyncpa [#allocation5], 1 }

</bundles_post_ra>
